<compile_context>
chip_gen: v5e
topology: v5e:2x2
jax: 0.10.0
libtpu: 0.0.40
codegen_flags: <defaults>
</compile_context>

<pallas_src>
import jax
import jax.numpy as jnp
from jax.experimental import pallas as pl
from jax.experimental.pallas import tpu as pltpu


# ---------------------------------------------------------------------------
# Primary path: zero-copy identity via input/output aliasing + no-op kernel.
# ---------------------------------------------------------------------------
def _identity_alias_kernel(x_hbm_ref, o_hbm_ref):
    # Output buffer aliases the input buffer (input_output_aliases={0: 0}), so
    # the bytes are already in place: Identity needs no data movement at all.
    del x_hbm_ref, o_hbm_ref


def _identity_alias(x):
    return pl.pallas_call(
        _identity_alias_kernel,
        out_shape=jax.ShapeDtypeStruct(x.shape, x.dtype),
        in_specs=[pl.BlockSpec(memory_space=pl.ANY)],   # leave data in HBM, no auto-DMA
        out_specs=pl.BlockSpec(memory_space=pl.ANY),
        input_output_aliases={0: 0},                    # output == input buffer
        cost_estimate=pl.CostEstimate(flops=0, transcendentals=0,
                                      bytes_accessed=0),
    )(x)


# ---------------------------------------------------------------------------
# Explicit-copy variant: one whole-array HBM->HBM DMA (no VMEM staging,
# no grid, no padding).  Runs at the HBM roofline on v5e / v6e / v7x.
# ---------------------------------------------------------------------------
def _identity_dma_kernel(x_hbm_ref, o_hbm_ref, sem):
    cp = pltpu.make_async_copy(x_hbm_ref, o_hbm_ref, sem)
    cp.start()
    cp.wait()


def identity_copy(x):
    """Identity that materializes a fresh output buffer via a single HBM DMA."""
    if x.size == 0:
        return x
    itemsize = jnp.dtype(x.dtype).itemsize
    return pl.pallas_call(
        _identity_dma_kernel,
        out_shape=jax.ShapeDtypeStruct(x.shape, x.dtype),
        in_specs=[pl.BlockSpec(memory_space=pl.ANY)],
        out_specs=pl.BlockSpec(memory_space=pl.ANY),
        scratch_shapes=[pltpu.SemaphoreType.DMA(())],
        cost_estimate=pl.CostEstimate(flops=0, transcendentals=0,
                                      bytes_accessed=2 * x.size * itemsize),
    )(x)


# ---------------------------------------------------------------------------
# Public wrapper (Identity.forward).
# ---------------------------------------------------------------------------
def identity(x):
    """Identity forward: returns x's values, computed through a Pallas kernel."""
    # Statically chosen path — the aliased no-op lowers on v5e/v6e/v7x and is
    # zero-copy under buffer donation.
    return _identity_alias(x)


if __name__ == "__main__":
    key = jax.random.PRNGKey(0)
    # Small NCHW input: batch=2, channels=4, spatial=16x16.
    x = jax.random.normal(key, (2, 4, 16, 16), dtype=jnp.float32)

    # Primary aliased no-op path (also exercised under jit, where it is free
    # with donation).
    y = jax.block_until_ready(identity(x))
    assert y.shape == x.shape and y.dtype == x.dtype
    assert bool(jnp.all(y == x))

    y_jit = jax.block_until_ready(jax.jit(identity)(x))
    assert y_jit.shape == x.shape and y_jit.dtype == x.dtype
    assert bool(jnp.all(y_jit == x))

    # Explicit single-DMA copy variant.
    y2 = jax.block_until_ready(identity_copy(x))
    assert y2.shape == x.shape and y2.dtype == x.dtype
    assert bool(jnp.all(y2 == x))

    print("KERNEL_OK")
</pallas_src>

<mosaic_0001>
module attributes {stable_mosaic.version = 11 : i64} {
  func.func @_identity_alias_kernel(%arg0: memref<2x4x16x16xf32, #tpu.memory_space<any>>, %arg1: memref<2x4x16x16xf32, #tpu.memory_space<any>>) attributes {dimension_semantics = [], scalar_prefetch = 0 : i64, scratch_operands = 0 : i64, tpu.core_type = #tpu.core_type<tc>} {
    return
  }
}

</mosaic_0001>

<bundles_post_ra>
// kernel: tpu_custom_call.1
= control target key start
LH: loop header
LB: loop body
LE: loop exit
PB: predicated region body
PF: predicated region fallthrough
CT: control target
= control target key end

     0   :  { %s16_s0 = inlined_call_operand.hbm [shape: f32[2,4,16,16], index: 0, kind: input, shape index: {}, may-alias: {0,1}]   ;;  %s17_s1 = inlined_call_operand.hbm [shape: f32[2,4,16,16], index: 1, kind: output, shape index: {}, may-alias: {0,1}]  }

</bundles_post_ra>
